<compile_context>
chip_gen: v7x
topology: tpu7x:2x2x1
jax: 0.10.0
libtpu: 0.0.40
codegen_flags: <defaults>
</compile_context>

<pallas_src>
import functools

import jax
import jax.numpy as jnp
from jax import lax
from jax.experimental import pallas as pl
from jax.experimental.pallas import tpu as pltpu


def _airl_fused_kernel(states_ref, next_states_ref, extras_t_ref,
                       w1_ref, b1_ref, w2_ref, b2_ref, w3t_ref, b3t_ref,
                       out_ref, *, gamma):
    """One batch tile:  out = g(s) + gamma * v(s') * (1 - done) - v(s) - log_pi.

    The fused network computes [g | v] for both s and s' in a single chain:
      x  = [s ; s']                              (2*TB, D)
      h1 = relu(x @ W1f + b1f)                   (2*TB, 2H)
      h2 = relu(h1 @ W2f + b2f)                  (2*TB, 2H)
      yT = W3t @ h2^T + b3t                      (2, 2*TB)   rows = [g, v]
    """
    tb = states_ref.shape[0]

    # Stack s and s' along the batch axis -> one matmul chain instead of three.
    x = jnp.concatenate([states_ref[...], next_states_ref[...]], axis=0)

    h = jnp.dot(x, w1_ref[...], preferred_element_type=jnp.float32) + b1_ref[...]
    h = jnp.maximum(h, 0.0)
    h = jnp.dot(h, w2_ref[...], preferred_element_type=jnp.float32) + b2_ref[...]
    h = jnp.maximum(h, 0.0)

    # Final layer in transposed form: (2, 2H) x (2*TB, 2H)^T -> (2, 2*TB).
    # This keeps the result lane-dense so the epilogue + store need no
    # relayout / masked (.,1) stores.
    y_t = lax.dot_general(
        w3t_ref[...], h,
        dimension_numbers=(((1,), (1,)), ((), ())),
        preferred_element_type=jnp.float32,
    ) + b3t_ref[...]                                      # (2, 2*TB)

    g_s = y_t[0:1, 0:tb]          # g(states)        (1, TB)
    v_s = y_t[1:2, 0:tb]          # v(states)        (1, TB)
    v_ns = y_t[1:2, tb:2 * tb]    # v(next_states)   (1, TB)

    dones = extras_t_ref[0:1, :]      # (1, TB)
    log_pis = extras_t_ref[1:2, :]    # (1, TB)

    out_ref[...] = g_s + gamma * v_ns * (1.0 - dones) - v_s - log_pis


def fuse_params(params):
    """Pack the two 3-layer MLPs into one lane-dense 2H-wide network.

    Layer 1: (D, 2H) = [gw1 | vw1];  Layer 2: block-diag(gw2, vw2) (2H, 2H);
    Layer 3: transposed, (2, 2H), row 0 = [gw3^T, 0], row 1 = [0, vw3^T].
    """
    (gw1, gb1, gw2, gb2, gw3, gb3,
     vw1, vb1, vw2, vb2, vw3, vb3) = params
    H = gw1.shape[1]
    dt = gw1.dtype
    zhh = jnp.zeros((H, H), dt)
    z1h = jnp.zeros((1, H), dt)

    w1 = jnp.concatenate([gw1, vw1], axis=1)                     # (D, 2H)
    b1 = jnp.concatenate([gb1, vb1], axis=1)                     # (1, 2H)
    w2 = jnp.concatenate(
        [jnp.concatenate([gw2, zhh], axis=1),
         jnp.concatenate([zhh, vw2], axis=1)], axis=0)           # (2H, 2H)
    b2 = jnp.concatenate([gb2, vb2], axis=1)                     # (1, 2H)
    w3t = jnp.concatenate(
        [jnp.concatenate([gw3.T, z1h], axis=1),
         jnp.concatenate([z1h, vw3.T], axis=1)], axis=0)         # (2, 2H)
    b3t = jnp.concatenate([gb3, vb3], axis=0)                    # (2, 1)
    return w1, b1, w2, b2, w3t, b3t


def airl_discriminator_forward(states, dones, log_pis, next_states, params,
                               gamma=0.99, block_batch=512):
    """Pallas forward.  block_batch must be a multiple of 128 (lane-dense out).

    For real workloads: TB in 512-2048 is a good range (v6e can go larger,
    v5e/v7x keep it modest to respect their smaller scoped-VMEM budgets).
    """
    assert block_batch % 128 == 0, "block_batch must be a multiple of 128"
    B, D = states.shape
    w1, b1, w2, b2, w3t, b3t = fuse_params(params)
    H2 = w1.shape[1]

    tb = block_batch
    b_pad = ((B + tb - 1) // tb) * tb
    pad = b_pad - B

    states_p = jnp.pad(states, ((0, pad), (0, 0)))
    next_states_p = jnp.pad(next_states, ((0, pad), (0, 0)))
    # Pack dones + log_pis into one lane-dense (2, B_pad) slab.
    extras = jnp.concatenate([dones, log_pis], axis=1)           # (B, 2)
    extras_t = jnp.pad(extras, ((0, pad), (0, 0))).T             # (2, B_pad)

    num_tiles = b_pad // tb

    def resident(shape):
        # Whole-array block, constant index -> DMA'd once, VMEM-resident.
        return pl.BlockSpec(shape, lambda i: (0, 0))

    out = pl.pallas_call(
        functools.partial(_airl_fused_kernel, gamma=gamma),
        out_shape=jax.ShapeDtypeStruct((1, b_pad), jnp.float32),
        grid=(num_tiles,),
        in_specs=[
            pl.BlockSpec((tb, D), lambda i: (i, 0)),     # states tile
            pl.BlockSpec((tb, D), lambda i: (i, 0)),     # next_states tile
            pl.BlockSpec((2, tb), lambda i: (0, i)),     # [dones; log_pis]^T tile
            resident((D, H2)), resident((1, H2)),        # fused layer 1
            resident((H2, H2)), resident((1, H2)),       # fused layer 2
            resident((2, H2)), resident((2, 1)),         # fused layer 3 (transposed)
        ],
        out_specs=pl.BlockSpec((1, tb), lambda i: (0, i)),
        compiler_params=pltpu.CompilerParams(
            dimension_semantics=("parallel",)),          # megacore-shardable
    )(states_p, next_states_p, extras_t, w1, b1, w2, b2, w3t, b3t)

    return out[0, :B].reshape(B, 1)


def init_params(key, state_dim, hidden=64):
    """Deterministic synthetic init.  Weights stored as (in, out); biases (1, out)."""
    ks = jax.random.split(key, 6)

    def lin(k, fan_in, fan_out, scale=0.1):
        kw, kb = jax.random.split(k)
        w = scale * jax.random.normal(kw, (fan_in, fan_out), jnp.float32)
        b = scale * jax.random.normal(kb, (1, fan_out), jnp.float32)
        return w, b

    gw1, gb1 = lin(ks[0], state_dim, hidden)
    gw2, gb2 = lin(ks[1], hidden, hidden)
    gw3, gb3 = lin(ks[2], hidden, 1)
    vw1, vb1 = lin(ks[3], state_dim, hidden)
    vw2, vb2 = lin(ks[4], hidden, hidden)
    vw3, vb3 = lin(ks[5], hidden, 1)
    return (gw1, gb1, gw2, gb2, gw3, gb3,
            vw1, vb1, vw2, vb2, vw3, vb3)


def reference_forward(states, dones, log_pis, next_states, params, gamma=0.99):
    """Pure-JAX reference mirroring the PyTorch module (unfused params)."""
    (gw1, gb1, gw2, gb2, gw3, gb3,
     vw1, vb1, vw2, vb2, vw3, vb3) = params

    hp = lax.Precision.HIGHEST

    def mlp(x, w1, b1, w2, b2, w3, b3):
        h = jnp.maximum(jnp.dot(x, w1, precision=hp) + b1, 0.0)
        h = jnp.maximum(jnp.dot(h, w2, precision=hp) + b2, 0.0)
        return jnp.dot(h, w3, precision=hp) + b3

    g = mlp(states, gw1, gb1, gw2, gb2, gw3, gb3)
    v = mlp(states, vw1, vb1, vw2, vb2, vw3, vb3)
    next_v = mlp(next_states, vw1, vb1, vw2, vb2, vw3, vb3)
    pred_f_theta = g + gamma * next_v * (1.0 - dones) - v
    return pred_f_theta - log_pis


if __name__ == "__main__":
    key = jax.random.PRNGKey(0)
    k_params, k_s, k_ns, k_d, k_lp = jax.random.split(key, 5)

    B = 200            # not a multiple of the tile -> exercises padding path
    STATE_DIM = 16
    HIDDEN = 64
    GAMMA = 0.99
    TB = 128           # small tile for the demo (multiple tiles in the grid)

    params = init_params(k_params, STATE_DIM, HIDDEN)

    states = jax.random.normal(k_s, (B, STATE_DIM), jnp.float32)
    next_states = jax.random.normal(k_ns, (B, STATE_DIM), jnp.float32)
    dones = (jax.random.uniform(k_d, (B, 1)) < 0.3).astype(jnp.float32)
    log_pis = jax.random.normal(k_lp, (B, 1), jnp.float32)

    out = airl_discriminator_forward(states, dones, log_pis, next_states,
                                     params, gamma=GAMMA, block_batch=TB)
    out = jax.block_until_ready(out)

    ref = reference_forward(states, dones, log_pis, next_states, params,
                            gamma=GAMMA)
    assert out.shape == (B, 1)
    assert jnp.allclose(out, ref, atol=1e-3, rtol=1e-3), (
        float(jnp.max(jnp.abs(out - ref))))

    print("KERNEL_OK")
</pallas_src>

<mosaic_0001>
module attributes {stable_mosaic.version = 11 : i64} {
  func.func @_airl_fused_kernel(%arg0: i32, %arg1: memref<128x16xf32, #tpu.memory_space<vmem>>, %arg2: memref<128x16xf32, #tpu.memory_space<vmem>>, %arg3: memref<2x128xf32, #tpu.memory_space<vmem>>, %arg4: memref<16x128xf32, #tpu.memory_space<vmem>>, %arg5: memref<1x128xf32, #tpu.memory_space<vmem>>, %arg6: memref<128x128xf32, #tpu.memory_space<vmem>>, %arg7: memref<1x128xf32, #tpu.memory_space<vmem>>, %arg8: memref<2x128xf32, #tpu.memory_space<vmem>>, %arg9: memref<2x1xf32, #tpu.memory_space<vmem>>, %arg10: memref<1x128xf32, #tpu.memory_space<vmem>>) attributes {dimension_semantics = [#tpu.dimension_semantics<parallel>], iteration_bounds = array<i64: 2>, scalar_prefetch = 0 : i64, scratch_operands = 0 : i64, tpu.core_type = #tpu.core_type<tc>, window_params = [{transform_indices = @transform_0, window_bounds = array<i64: 128, 16>}, {transform_indices = @transform_1, window_bounds = array<i64: 128, 16>}, {transform_indices = @transform_2, window_bounds = array<i64: 2, 128>}, {pipeline_mode = #tpu.pipeline_mode<synchronous>, transform_indices = @transform_3, window_bounds = array<i64: 16, 128>}, {pipeline_mode = #tpu.pipeline_mode<synchronous>, transform_indices = @transform_4, window_bounds = array<i64: 1, 128>}, {pipeline_mode = #tpu.pipeline_mode<synchronous>, transform_indices = @transform_5, window_bounds = array<i64: 128, 128>}, {pipeline_mode = #tpu.pipeline_mode<synchronous>, transform_indices = @transform_6, window_bounds = array<i64: 1, 128>}, {pipeline_mode = #tpu.pipeline_mode<synchronous>, transform_indices = @transform_7, window_bounds = array<i64: 2, 128>}, {pipeline_mode = #tpu.pipeline_mode<synchronous>, transform_indices = @transform_8, window_bounds = array<i64: 2, 1>}, {transform_indices = @transform_9, window_bounds = array<i64: 1, 128>}]} {
    %c0 = arith.constant 0 : index
    %c0_0 = arith.constant 0 : index
    %0 = vector.load %arg1[%c0, %c0_0] : memref<128x16xf32, #tpu.memory_space<vmem>>, vector<128x16xf32>
    %c0_1 = arith.constant 0 : index
    %c0_2 = arith.constant 0 : index
    %1 = vector.load %arg2[%c0_1, %c0_2] : memref<128x16xf32, #tpu.memory_space<vmem>>, vector<128x16xf32>
    %2 = tpu.concatenate %0, %1 in 0 : vector<128x16xf32>, vector<128x16xf32> -> vector<256x16xf32>
    %c0_3 = arith.constant 0 : index
    %c0_4 = arith.constant 0 : index
    %3 = vector.load %arg4[%c0_3, %c0_4] : memref<16x128xf32, #tpu.memory_space<vmem>>, vector<16x128xf32>
    %cst = arith.constant dense<0.000000e+00> : vector<256x128xf32>
    %4 = tpu.matmul %2, %3, %cst {dimension_numbers = #tpu.dot_dimension_numbers<[1], [0], [0], [1], [0, 0, 1, 1], [], []>} : vector<256x16xf32>, vector<16x128xf32>, vector<256x128xf32> -> vector<256x128xf32>
    %c0_5 = arith.constant 0 : index
    %c0_6 = arith.constant 0 : index
    %5 = vector.load %arg5[%c0_5, %c0_6] : memref<1x128xf32, #tpu.memory_space<vmem>>, vector<1x128xf32>
    %6 = vector.broadcast %5 : vector<1x128xf32> to vector<256x128xf32>
    %7 = arith.addf %4, %6 : vector<256x128xf32>
    %cst_7 = arith.constant 0.000000e+00 : f32
    %8 = vector.broadcast %cst_7 : f32 to vector<256x128xf32>
    %9 = arith.maximumf %7, %8 : vector<256x128xf32>
    %c0_8 = arith.constant 0 : index
    %c0_9 = arith.constant 0 : index
    %10 = vector.load %arg6[%c0_8, %c0_9] : memref<128x128xf32, #tpu.memory_space<vmem>>, vector<128x128xf32>
    %cst_10 = arith.constant dense<0.000000e+00> : vector<256x128xf32>
    %11 = tpu.matmul %9, %10, %cst_10 {dimension_numbers = #tpu.dot_dimension_numbers<[1], [0], [0], [1], [0, 0, 1, 1], [], []>} : vector<256x128xf32>, vector<128x128xf32>, vector<256x128xf32> -> vector<256x128xf32>
    %c0_11 = arith.constant 0 : index
    %c0_12 = arith.constant 0 : index
    %12 = vector.load %arg7[%c0_11, %c0_12] : memref<1x128xf32, #tpu.memory_space<vmem>>, vector<1x128xf32>
    %13 = vector.broadcast %12 : vector<1x128xf32> to vector<256x128xf32>
    %14 = arith.addf %11, %13 : vector<256x128xf32>
    %cst_13 = arith.constant 0.000000e+00 : f32
    %15 = vector.broadcast %cst_13 : f32 to vector<256x128xf32>
    %16 = arith.maximumf %14, %15 : vector<256x128xf32>
    %c0_14 = arith.constant 0 : index
    %c0_15 = arith.constant 0 : index
    %17 = vector.load %arg8[%c0_14, %c0_15] : memref<2x128xf32, #tpu.memory_space<vmem>>, vector<2x128xf32>
    %cst_16 = arith.constant dense<0.000000e+00> : vector<2x256xf32>
    %18 = tpu.matmul %17, %16, %cst_16 {dimension_numbers = #tpu.dot_dimension_numbers<[1], [1], [0], [0], [0, 0, 1, 0], [], []>} : vector<2x128xf32>, vector<256x128xf32>, vector<2x256xf32> -> vector<2x256xf32>
    %c0_17 = arith.constant 0 : index
    %c0_18 = arith.constant 0 : index
    %19 = vector.load %arg9[%c0_17, %c0_18] : memref<2x1xf32, #tpu.memory_space<vmem>>, vector<2x1xf32>
    %20 = vector.broadcast %19 : vector<2x1xf32> to vector<2x256xf32>
    %21 = arith.addf %18, %20 : vector<2x256xf32>
    %22 = vector.extract_strided_slice %21 {offsets = [0, 0], sizes = [1, 128], strides = [1, 1]} : vector<2x256xf32> to vector<1x128xf32>
    %23 = vector.extract_strided_slice %21 {offsets = [1, 0], sizes = [1, 128], strides = [1, 1]} : vector<2x256xf32> to vector<1x128xf32>
    %24 = vector.extract_strided_slice %21 {offsets = [1, 128], sizes = [1, 128], strides = [1, 1]} : vector<2x256xf32> to vector<1x128xf32>
    %c0_19 = arith.constant 0 : index
    %c0_20 = arith.constant 0 : index
    %25 = vector.load %arg3[%c0_19, %c0_20] : memref<2x128xf32, #tpu.memory_space<vmem>>, vector<1x128xf32>
    %c1 = arith.constant 1 : index
    %c0_21 = arith.constant 0 : index
    %26 = vector.load %arg3[%c1, %c0_21] : memref<2x128xf32, #tpu.memory_space<vmem>>, vector<1x128xf32>
    %cst_22 = arith.constant 9.900000e-01 : f32
    %27 = vector.broadcast %cst_22 : f32 to vector<1x128xf32>
    %28 = arith.mulf %27, %24 : vector<1x128xf32>
    %cst_23 = arith.constant 1.000000e+00 : f32
    %29 = vector.broadcast %cst_23 : f32 to vector<1x128xf32>
    %30 = arith.subf %29, %25 : vector<1x128xf32>
    %31 = arith.mulf %28, %30 : vector<1x128xf32>
    %32 = arith.addf %22, %31 : vector<1x128xf32>
    %33 = arith.subf %32, %23 : vector<1x128xf32>
    %34 = arith.subf %33, %26 : vector<1x128xf32>
    %c0_24 = arith.constant 0 : index
    %c0_25 = arith.constant 0 : index
    %35 = vector.load %arg10[%c0_24, %c0_25] : memref<1x128xf32, #tpu.memory_space<vmem>>, vector<1x128xf32>
    tpu.vector_store %arg10[%c0_24, %c0_25], %34 {strides = array<i32>} : memref<1x128xf32, #tpu.memory_space<vmem>>, vector<1x128xf32>,
    return
  }
  func.func @transform_0(%arg0: i32) -> (i32, i32) {
    %c0_i32 = arith.constant 0 : i32
    %c0_i32_0 = arith.constant 0 : i32
    return %arg0, %c0_i32 : i32, i32
  }
  func.func @transform_1(%arg0: i32) -> (i32, i32) {
    %c0_i32 = arith.constant 0 : i32
    %c0_i32_0 = arith.constant 0 : i32
    return %arg0, %c0_i32 : i32, i32
  }
  func.func @transform_2(%arg0: i32) -> (i32, i32) {
    %c0_i32 = arith.constant 0 : i32
    %c0_i32_0 = arith.constant 0 : i32
    return %c0_i32, %arg0 : i32, i32
  }
  func.func @transform_3(%arg0: i32) -> (i32, i32) {
    %c0_i32 = arith.constant 0 : i32
    %c0_i32_0 = arith.constant 0 : i32
    %c0_i32_1 = arith.constant 0 : i32
    return %c0_i32, %c0_i32_0 : i32, i32
  }
  func.func @transform_4(%arg0: i32) -> (i32, i32) {
    %c0_i32 = arith.constant 0 : i32
    %c0_i32_0 = arith.constant 0 : i32
    %c0_i32_1 = arith.constant 0 : i32
    return %c0_i32, %c0_i32_0 : i32, i32
  }
  func.func @transform_5(%arg0: i32) -> (i32, i32) {
    %c0_i32 = arith.constant 0 : i32
    %c0_i32_0 = arith.constant 0 : i32
    %c0_i32_1 = arith.constant 0 : i32
    return %c0_i32, %c0_i32_0 : i32, i32
  }
  func.func @transform_6(%arg0: i32) -> (i32, i32) {
    %c0_i32 = arith.constant 0 : i32
    %c0_i32_0 = arith.constant 0 : i32
    %c0_i32_1 = arith.constant 0 : i32
    return %c0_i32, %c0_i32_0 : i32, i32
  }
  func.func @transform_7(%arg0: i32) -> (i32, i32) {
    %c0_i32 = arith.constant 0 : i32
    %c0_i32_0 = arith.constant 0 : i32
    %c0_i32_1 = arith.constant 0 : i32
    return %c0_i32, %c0_i32_0 : i32, i32
  }
  func.func @transform_8(%arg0: i32) -> (i32, i32) {
    %c0_i32 = arith.constant 0 : i32
    %c0_i32_0 = arith.constant 0 : i32
    %c0_i32_1 = arith.constant 0 : i32
    return %c0_i32, %c0_i32_0 : i32, i32
  }
  func.func @transform_9(%arg0: i32) -> (i32, i32) {
    %c0_i32 = arith.constant 0 : i32
    %c0_i32_0 = arith.constant 0 : i32
    return %c0_i32, %arg0 : i32, i32
  }
}

</mosaic_0001>

<bundles_post_ra>
// kernel: tpu_custom_call.1
= control target key start
LH: loop header
LB: loop body
LE: loop exit
PB: predicated region body
PF: predicated region fallthrough
CT: control target
= control target key end

     0   :  { %14 = vsyncpa [#allocation3], 0  ;;  %s2098_s0 = inlined_call_operand.vmem [shape: f32[256,16], index: 0, kind: input, shape index: {}]   ;;  %s2099_s1 = inlined_call_operand.vmem [shape: f32[256,16], index: 1, kind: input, shape index: {}]   ;;  %s2100_s2 = inlined_call_operand.vmem [shape: f32[2,256], index: 2, kind: input, shape index: {}]   ;;  %s2101_s3 = inlined_call_operand.vmem [shape: f32[16,128], index: 3, kind: input, shape index: {}]   ;;  %s2102_s4 = inlined_call_operand.vmem [shape: f32[1,128], index: 4, kind: input, shape index: {}]   ;;  %s2103_s5 = inlined_call_operand.vmem [shape: f32[128,128], index: 5, kind: input, shape index: {}]   ;;  %s2104_s6 = inlined_call_operand.vmem [shape: f32[1,128], index: 6, kind: input, shape index: {}]   ;;  %s2105_s7 = inlined_call_operand.vmem [shape: f32[2,128], index: 7, kind: input, shape index: {}]   ;;  %s2106_s8 = inlined_call_operand.vmem [shape: f32[2,1], index: 8, kind: input, shape index: {}]   ;;  %s2107_s9 = inlined_call_operand.hbm [shape: f32[1,256], index: 9, kind: output, shape index: {}]  }
   0x1   :  { %16 = vsyncpa [#allocation3 + $0x1], 0  ;;  %s1753_s30 = smov 0   ;;  %s1755_s10 = smov 0  }
   0x2   :  { %s1757_s11 = smov 0   ;;  %s1759_s12 = smov 0  }
   0x3 LB: > { %s1774_s13 = sadd.s32 4294967295, %s1699_s12   ;;  %s1234_s14 = sadd.s32 4294967294, %s1699_s12   ;;  %s1699_s12 = sphi %s1759_s12, %s2113_s12   ;;  %s1695_s11 = sphi %s1757_s11, %s2112_s11   ;;  %s1691_s10 = sphi %s1755_s10, %s2111_s10   ;;  %s1687_s30 = sphi %s1753_s30, %s2110_s30  }
   0x4   : > { %s1778_s15 = sadd.s32 1, %s1699_s12   ;;  %s233_s16 = sadd.s32 1, %s1695_s11 }
   0x5   : > { %s230_s17 = ssub.s32 %s1699_s12, %s1778_s15  ;;  %p243_p0 = scmp.ne.s32.totalorder %s1695_s11, %s1691_s10 }
   0x6   : > { %p231_p1 = scmp.eq.s32.totalorder %s230_s17, 0  ;;  %p244_p2 = scmp.eq.s32.totalorder %s1774_s13, 1 }
   0x7   : > { %p249_p3 = scmp.ne.s32.totalorder %s1691_s10, %s1687_s30  ;;  %p250_p4 = scmp.eq.s32.totalorder %s1234_s14, 1 }
   0x8   : > { %s1789_s18 = scalar_select %p231_p1, %s1695_s11, %s233_s16  }
   0x9   : > { %p1791_p5 = por %p244_p2, %p243_p0  ;;  %p1795_p6 = por %p250_p4, %p249_p3 }
   0xa   : > { %p1237_p7 = scmp.ge.s32.totalorder %s1699_s12, 1  ;;  %p311_p8 = scmp.lt.s32.totalorder %s1699_s12, 3 }
   0xc   : > { %p312_p9 = pnand %p1237_p7, %p311_p8 }
   0xd   : > { %v403_v0 = vld [vmem:[%s2101_s3] sm:$0xff] (!%p312_p9)  ;;  %v404_v1 = vld [vmem:[%s2101_s3 + $0x8] sm:$0xff] (!%p312_p9)  ;;  %s1808_s25 = sshll.u32 (!%p312_p9), %s1774_s13, 4  ;;  %v768_v5 = vld [vmem:[%s2103_s5 + $0x10] sm:$0xff] (!%p312_p9)  ;;  %vm412_vm0 = vcmask (!%p312_p9), 130048   ;;  %p367_p11 = scmp.lt.s32.totalorder (!%p312_p9), %s1774_s13, 1 }
   0xe   : > { %315 = sbr.rel (%p312_p9) target bundleno = 801 (0x321), region = 56  ;;  %v766_v2 = vld [vmem:[%s2103_s5] sm:$0xff] (!%p312_p9)  ;;  %v1528_v3 = vpack.c.bf16 (!%p312_p9), %v404_v1, %v403_v0  ;;  %p356_p10 = scmp.lt.s32.totalorder (!%p312_p9), %s1808_s25, 31  ;;  %v767_v4 = vld [vmem:[%s2103_s5 + $0x8] sm:$0xff] (!%p312_p9)  ;;  %v769_v6 = vld [vmem:[%s2103_s5 + $0x18] sm:$0xff] (!%p312_p9) }
   0xf   : > { %v1532_v7 = vpack.c.bf16 (!%p312_p9), %v767_v4, %v766_v2  ;;  %v1536_v8 = vpack.c.bf16 (!%p312_p9), %v769_v6, %v768_v5  ;;  %v770_v9 = vld [vmem:[%s2103_s5 + $0x20] sm:$0xff] (!%p312_p9)  ;;  %v771_v10 = vld [vmem:[%s2103_s5 + $0x28] sm:$0xff] (!%p312_p9)  ;;  %v772_v12 = vld [vmem:[%s2103_s5 + $0x30] sm:$0xff] (!%p312_p9)  ;;  %s353_s27 = sand.u32 (!%p312_p9), 1, %s1691_s10   ;;  %s2056_s21 = scalar_lea.hbm (!%p312_p9), %s2107_s9, %s1808_s25 }
  0x10   : > { %1529 = vmatprep.subr.bf16.mxu0 (!%p312_p9), %v1528_v3  ;;  %v1540_v11 = vpack.c.bf16 (!%p312_p9), %v771_v10, %v770_v9  ;;  %v773_v13 = vld [vmem:[%s2103_s5 + $0x38] sm:$0xff] (!%p312_p9)  ;;  %v774_v20 = vld [vmem:[%s2103_s5 + $0x40] sm:$0xff] (!%p312_p9)  ;;  %v775_v21 = vld [vmem:[%s2103_s5 + $0x48] sm:$0xff] (!%p312_p9) }
  0x11   : > { %1531 = vmatpush3.bf16.msra.mxu0 (!%p312_p9), %v1528_v3  ;;  %1533 = vmatprep.subr.bf16.mxu1 (!%p312_p9), %v1532_v7  ;;  %v1544_v18 = vpack.c.bf16 (!%p312_p9), %v773_v13, %v772_v12  ;;  %v1548_v23 = vpack.c.bf16 (!%p312_p9), %v775_v21, %v774_v20  ;;  %v776_v25 = vld [vmem:[%s2103_s5 + $0x50] sm:$0xff] (!%p312_p9)  ;;  %v777_v26 = vld [vmem:[%s2103_s5 + $0x58] sm:$0xff] (!%p312_p9)  ;;  %v778_v30 = vld [vmem:[%s2103_s5 + $0x60] sm:$0xff] (!%p312_p9) }
  0x12   : > { %1535 = vmatpush3.bf16.msra.mxu1 (!%p312_p9), %v1532_v7  ;;  %v1552_v28 = vpack.c.bf16 (!%p312_p9), %v777_v26, %v776_v25  ;;  %v779_v31 = vld [vmem:[%s2103_s5 + $0x68] sm:$0xff] (!%p312_p9)  ;;  %v780_v56 = vld [vmem:[%s2103_s5 + $0x70] sm:$0xff] (!%p312_p9)  ;;  %v781_v57 = vld [vmem:[%s2103_s5 + $0x78] sm:$0xff] (!%p312_p9) }
  0x13   : > { %1537 = vmatprep.subr.bf16.mxu1 (!%p312_p9), %v1536_v8  ;;  %v1556_v33 = vpack.c.bf16 (!%p312_p9), %v779_v31, %v778_v30  ;;  %v1560_v58 = vpack.c.bf16 (!%p312_p9), %v781_v57, %v780_v56  ;;  %v1944_v59 = vld [vmem:[%s2102_s4] ss:$0 sm:$0xff] (!%p312_p9) }
  0x15   : > { %s1824_s22 = scalar_select %p356_p10, %s1808_s25, 31 }
  0x16   : > { %1539 = vmatpush3.bf16.msra.mxu1 %v1536_v8  ;;  %s2115_s13 = smov (!%p367_p11, %s1774_s13), 1 }
  0x17   : > { %s1239_s28 = sshll.u32 %s1824_s22, 3  ;;  %1541 = vmatprep.subr.bf16.mxu1 %v1540_v11 }
  0x18   : > { %s1838_s16 = scalar_lea.vmem %s2098_s0, %s1239_s28  ;;  %s1897_s23 = scalar_lea.vmem %s2099_s1, %s1239_s28 }
  0x19   : > { %v371_v14 = vld [vmem:[%s1838_s16] sm:$0xff]  ;;  %v372_v15 = vld [vmem:[%s1838_s16 + $0x8] sm:$0xff]  ;;  %v373_v16 = vld [vmem:[%s1838_s16 + $0x10] sm:$0xff]  ;;  %s1242_s28 = sshll.u32 %s2115_s13, 1  ;;  %s354_s13 = scalar_lea.vmem [#allocation2], %s353_s27 }
  0x1a   : > { %1400 = vmatprep.mubr.msk.f32.mxu0 %vm412_vm0, %v371_v14  ;;  %v374_v17 = vld [vmem:[%s1838_s16 + $0x18] sm:$0xff]  ;;  %v375_v19 = vld [vmem:[%s1838_s16 + $0x20] sm:$0xff]  ;;  %1543 = vmatpush3.bf16.msra.mxu1 %v1540_v11  ;;  %v376_v22 = vld [vmem:[%s1838_s16 + $0x28] sm:$0xff]  ;;  %s370_s26 = scalar_lea.vmem %s2100_s2, %s1242_s28  ;;  %s1155_s29 = sshll.u32 %s354_s13, 4  ;;  %s2058_s29 = int_to_ptr.vmem [resolvable:$true] %s1155_s29 }
  0x1b   : > { %1401 = vmatmul.mubr.msk.f32.vlgmr.msra.gmra.mrb[0].mxu0 %vm412_vm0, %v372_v15  ;;  %1545 = vmatprep.subr.bf16.mxu1 %v1544_v18  ;;  %v377_v24 = vld [vmem:[%s1838_s16 + $0x30] sm:$0xff]  ;;  %v378_v27 = vld [vmem:[%s1838_s16 + $0x38] sm:$0xff]  ;;  %v379_v29 = vld [vmem:[%s1838_s16 + $0x40] sm:$0xff]  ;;  %s1637_s22 = scalar_lea.vmem %s2058_s29, 16  ;;  %s1702_s28 = smov [#allocation2]  }
  0x1c   : > { %1403 = vmatprep.mubr.msk.f32.mxu0 %vm412_vm0, %v373_v16  ;;  %v380_v32 = vld [vmem:[%s1838_s16 + $0x48] sm:$0xff]  ;;  %v381_v34 = vld [vmem:[%s1838_s16 + $0x50] sm:$0xff]  ;;  %v382_v35 = vld [vmem:[%s1838_s16 + $0x58] sm:$0xff]  ;;  %p1638_p12 = scmp.ne.s32.totalorder %s2058_s29, %s1637_s22 }
  0x1d   : > { %v383_v36 = vld [vmem:[%s1838_s16 + $0x60] sm:$0xff]  ;;  %v384_v37 = vld [vmem:[%s1838_s16 + $0x68] sm:$0xff]  ;;  %v385_v38 = vld [vmem:[%s1838_s16 + $0x70] sm:$0xff] }
  0x1e   : > { %1547 = vmatpush3.bf16.msra.mxu1 %v1544_v18  ;;  %v386_v39 = vld [vmem:[%s1838_s16 + $0x78] sm:$0xff]  ;;  %v387_v40 = vld [vmem:[%s1897_s23] sm:$0xff]  ;;  %v388_v41 = vld [vmem:[%s1897_s23 + $0x8] sm:$0xff]  ;;  %p1639_p13 = pnand %p1638_p12, %p1791_p5  ;;  %s1641_s16 = sshll.u32 %s1702_s28, 4  ;;  %s1642_s16 = int_to_ptr.vmem [resolvable:$false] %s1641_s16 }
  0x1f   : > { %1404 = vmatmul.mubr.msk.f32.gmra.mrb[2].mxu0 %vm412_vm0, %v374_v17  ;;  %1549 = vmatprep.subr.bf16.mxu1 %v1548_v23  ;;  %v389_v42 = vld [vmem:[%s1897_s23 + $0x10] sm:$0xff]  ;;  %v390_v43 = vld [vmem:[%s1897_s23 + $0x18] sm:$0xff]  ;;  %v391_v44 = vld [vmem:[%s1897_s23 + $0x20] sm:$0xff]  ;;  %s1643_s24 = scalar_lea.vmem %s1642_s16, 32  ;;  %p1644_p1 = scmp.lt.s32.totalorder %s2058_s29, %s1642_s16 }
  0x20   : > { %1406 = vmatprep.mubr.msk.f32.mxu0 %vm412_vm0, %v375_v19  ;;  %v392_v45 = vld [vmem:[%s1897_s23 + $0x28] sm:$0xff]  ;;  %v393_v46 = vld [vmem:[%s1897_s23 + $0x30] sm:$0xff]  ;;  %v394_v47 = vld [vmem:[%s1897_s23 + $0x38] sm:$0xff]  ;;  %p1640_p0 = pneg %p1639_p13  ;;  %p1645_p2 = scmp.lt.s32.totalorder %s1643_s24, %s1637_s22 }
  0x21   : > { %v395_v48 = vld [vmem:[%s1897_s23 + $0x40] sm:$0xff]  ;;  %v396_v49 = vld [vmem:[%s1897_s23 + $0x48] sm:$0xff]  ;;  %v397_v50 = vld [vmem:[%s1897_s23 + $0x50] sm:$0xff] }
  0x22   : > { %1551 = vmatpush3.bf16.msra.mxu1 %v1548_v23  ;;  %v398_v51 = vld [vmem:[%s1897_s23 + $0x58] sm:$0xff]  ;;  %v399_v52 = vld [vmem:[%s1897_s23 + $0x60] sm:$0xff]  ;;  %v400_v53 = vld [vmem:[%s1897_s23 + $0x68] sm:$0xff]  ;;  %p1646_p3 = por %p1645_p2, %p1644_p1 }
  0x23   : > { %1407 = vmatmul.mubr.msk.f32.gmra.mrb[4].mxu0 %vm412_vm0, %v376_v22  ;;  %1553 = vmatprep.subr.bf16.mxu1 %v1552_v28  ;;  %v401_v54 = vld [vmem:[%s1897_s23 + $0x70] sm:$0xff]  ;;  %v402_v55 = vld [vmem:[%s1897_s23 + $0x78] sm:$0xff]  ;;  %s1143_s23 = scalar_lea.sflag [#allocation3], %s353_s27 }
  0x24   : > { %1409 = vmatprep.mubr.msk.f32.mxu0 %vm412_vm0, %v377_v24  ;;  %p1647_p4 = pnand %p1646_p3, %p1640_p0 }
  0x26   : > { %1555 = vmatpush3.bf16.msra.mxu1 %v1552_v28 }
  0x27   : > { %1410 = vmatmul.mubr.msk.f32.gmra.mrb[6].mxu0 %vm412_vm0, %v378_v27  ;;  %1557 = vmatprep.subr.bf16.mxu1 %v1556_v33 }
  0x28   : > { %1412 = vmatprep.mubr.msk.f32.mxu0 %vm412_vm0, %v379_v29 }
  0x2a   : > { %1559 = vmatpush3.bf16.msra.mxu1 %v1556_v33 }
  0x2b   : > { %1413 = vmatmul.mubr.msk.f32.gmra.mrb[8].mxu0 %vm412_vm0, %v380_v32  ;;  %1561 = vmatprep.subr.bf16.mxu1 %v1560_v58 }
  0x2c   : > { %1415 = vmatprep.mubr.msk.f32.mxu0 %vm412_vm0, %v381_v34 }
  0x2e   : > { %1563 = vmatpush3.bf16.msra.mxu1 %v1560_v58 }
  0x2f   : > { %1416 = vmatmul.mubr.msk.f32.gmra.mrb[10].mxu0 %vm412_vm0, %v382_v35 }
  0x30   : > { %1418 = vmatprep.mubr.msk.f32.mxu0 %vm412_vm0, %v383_v36 }
  0x33   : > { %1419 = vmatmul.mubr.msk.f32.gmra.mrb[12].mxu0 %vm412_vm0, %v384_v37 }
  0x34   : > { %1421 = vmatprep.mubr.msk.f32.mxu0 %vm412_vm0, %v385_v38 }
  0x37   : > { %1422 = vmatmul.mubr.msk.f32.gmra.mrb[14].mxu0 %vm412_vm0, %v386_v39 }
  0x38   : > { %1424 = vmatprep.mubr.msk.f32.mxu0 %vm412_vm0, %v387_v40 }
  0x3b   : > { %1425 = vmatmul.mubr.msk.f32.gmra.mrb[16].mxu0 %vm412_vm0, %v388_v41 }
  0x3c   : > { %1427 = vmatprep.mubr.msk.f32.mxu0 %vm412_vm0, %v389_v42 }
  0x3f   : > { %1428 = vmatmul.mubr.msk.f32.gmra.mrb[18].mxu0 %vm412_vm0, %v390_v43 }
  0x40   : > { %1430 = vmatprep.mubr.msk.f32.mxu0 %vm412_vm0, %v391_v44 }
  0x43   : > { %1431 = vmatmul.mubr.msk.f32.gmra.mrb[20].mxu0 %vm412_vm0, %v392_v45 }
  0x44   : > { %1433 = vmatprep.mubr.msk.f32.mxu0 %vm412_vm0, %v393_v46 }
  0x47   : > { %1434 = vmatmul.mubr.msk.f32.gmra.mrb[22].mxu0 %vm412_vm0, %v394_v47 }
  0x48   : > { %1436 = vmatprep.mubr.msk.f32.mxu0 %vm412_vm0, %v395_v48 }
  0x4b   : > { %1437 = vmatmul.mubr.msk.f32.gmra.mrb[24].mxu0 %vm412_vm0, %v396_v49 }
  0x4c   : > { %1439 = vmatprep.mubr.msk.f32.mxu0 %vm412_vm0, %v397_v50 }
  0x4f   : > { %1440 = vmatmul.mubr.msk.f32.gmra.mrb[26].mxu0 %vm412_vm0, %v398_v51 }
  0x50   : > { %1442 = vmatprep.mubr.msk.f32.mxu0 %vm412_vm0, %v399_v52 }
  0x53   : > { %1443 = vmatmul.mubr.msk.f32.gmra.mrb[28].mxu0 %vm412_vm0, %v400_v53 }
  0x54   : > { %1445 = vmatprep.mubr.msk.f32.mxu0 %vm412_vm0, %v401_v54 }
  0x57   : > { %1446 = vmatmul.mubr.msk.f32.gmra.mrb[30].mxu0 %vm412_vm0, %v402_v55 }
  0xee   : > { %v1402_v60 = vpop.f32.mrb[0].mxu0 }
  0xef   : > { %v581_v61 = vadd.f32 %v1402_v60, %v1944_v59  ;;  %v575_v62 = vpop.f32.mrb[1].mxu0 }
  0xf0   : > { %v576_v63 = vadd.f32 %v1944_v59, %v575_v62 }
  0xf1   : > { %v735_v2 = vmax.f32 %v581_v61, 0.0 }
  0xf2   : > { %v1405_v0 = vpop.f32.mrb[2].mxu0  ;;  %v734_v1 = vmax.f32 %v576_v63, 0.0 }
  0xf3   : > { %v591_v3 = vadd.f32 %v1405_v0, %v1944_v59  ;;  %v585_v4 = vpop.f32.mrb[3].mxu0 }
  0xf4   : > { %v586_v5 = vadd.f32 %v1944_v59, %v585_v4  ;;  %1480 = vmatprep.mubr.f32.mxu1 %v734_v1 }
  0xf5   : > { %1481 = vmatmul.mubr.f32.vlgmr.msra.gmra.mrb[0].mxu1 %v735_v2  ;;  %v737_v8 = vmax.f32 %v591_v3, 0.0 }
  0xf6   : > { %v736_v6 = vmax.f32 %v586_v5, 0.0  ;;  %v1408_v7 = vpop.f32.mrb[4].mxu0 }
  0xf7   : > { %v601_v9 = vadd.f32 %v1408_v7, %v1944_v59  ;;  %v595_v10 = vpop.f32.mrb[5].mxu0 }
  0xf8   : > { %v596_v11 = vadd.f32 %v1944_v59, %v595_v10  ;;  %1483 = vmatprep.mubr.f32.mxu1 %v736_v6 }
  0xf9   : > { %1484 = vmatmul.mubr.f32.gmra.mrb[2].mxu1 %v737_v8  ;;  %v739_v14 = vmax.f32 %v601_v9, 0.0 }
  0xfa   : > { %v738_v12 = vmax.f32 %v596_v11, 0.0  ;;  %v1411_v13 = vpop.f32.mrb[6].mxu0 }
  0xfb   : > { %v611_v15 = vadd.f32 %v1411_v13, %v1944_v59  ;;  %v605_v16 = vpop.f32.mrb[7].mxu0 }
  0xfc   : > { %v606_v17 = vadd.f32 %v1944_v59, %v605_v16  ;;  %1486 = vmatprep.mubr.f32.mxu1 %v738_v12 }
  0xfd   : > { %1487 = vmatmul.mubr.f32.gmra.mrb[4].mxu1 %v739_v14  ;;  %v741_v20 = vmax.f32 %v611_v15, 0.0 }
  0xfe   : > { %v740_v18 = vmax.f32 %v606_v17, 0.0  ;;  %v1414_v19 = vpop.f32.mrb[8].mxu0 }
  0xff   : > { %v621_v21 = vadd.f32 %v1414_v19, %v1944_v59  ;;  %v615_v22 = vpop.f32.mrb[9].mxu0 }
 0x100   : > { %v616_v23 = vadd.f32 %v1944_v59, %v615_v22  ;;  %1489 = vmatprep.mubr.f32.mxu1 %v740_v18 }
 0x101   : > { %1490 = vmatmul.mubr.f32.gmra.mrb[6].mxu1 %v741_v20  ;;  %v743_v26 = vmax.f32 %v621_v21, 0.0 }
 0x102   : > { %v742_v24 = vmax.f32 %v616_v23, 0.0  ;;  %v1417_v25 = vpop.f32.mrb[10].mxu0 }
 0x103   : > { %v631_v27 = vadd.f32 %v1417_v25, %v1944_v59  ;;  %v625_v28 = vpop.f32.mrb[11].mxu0 }
 0x104   : > { %v626_v29 = vadd.f32 %v1944_v59, %v625_v28  ;;  %1492 = vmatprep.mubr.f32.mxu1 %v742_v24 }
 0x105   : > { %1493 = vmatmul.mubr.f32.gmra.mrb[8].mxu1 %v743_v26  ;;  %v745_v32 = vmax.f32 %v631_v27, 0.0 }
 0x106   : > { %v744_v30 = vmax.f32 %v626_v29, 0.0  ;;  %v1420_v31 = vpop.f32.mrb[12].mxu0  ;;  %v1981_v29 = vld [vmem:[%s2105_s7] sm:$0x3] }
 0x107   : > { %v641_v33 = vadd.f32 %v1420_v31, %v1944_v59  ;;  %v635_v34 = vpop.f32.mrb[13].mxu0  ;;  %1394 = vmatprep.mubr.f32.mxu0 %v1981_v29  ;;  %v1701_v31 = vmov 0  }
 0x108   : > { %v636_v35 = vadd.f32 %v1944_v59, %v635_v34  ;;  %1495 = vmatprep.mubr.f32.mxu1 %v744_v30  ;;  %v1047_v30 = vld [vmem:[%s2106_s8] sm:$0x3]  ;;  %1636 = vset.pattern.permute.xlu0 %v1701_v31 }
 0x109   : > { %1496 = vmatmul.mubr.f32.gmra.mrb[10].mxu1 %v745_v32  ;;  %v747_v38 = vmax.f32 %v641_v33, 0.0  ;;  %1050 = vperm.xlu0 %1636, %v1047_v30  }
 0x10a   : > { %v746_v36 = vmax.f32 %v636_v35, 0.0  ;;  %v1423_v37 = vpop.f32.mrb[14].mxu0 }
 0x10b   : > { %v651_v39 = vadd.f32 %v1423_v37, %v1944_v59  ;;  %v645_v40 = vpop.f32.mrb[15].mxu0 }
 0x10c   : > { %v646_v41 = vadd.f32 %v1944_v59, %v645_v40  ;;  %1498 = vmatprep.mubr.f32.mxu1 %v746_v36 }
 0x10d   : > { %1499 = vmatmul.mubr.f32.gmra.mrb[12].mxu1 %v747_v38  ;;  %v749_v44 = vmax.f32 %v651_v39, 0.0 }
 0x10e   : > { %v748_v42 = vmax.f32 %v646_v41, 0.0  ;;  %v1426_v43 = vpop.f32.mrb[16].mxu0 }
 0x10f   : > { %v661_v45 = vadd.f32 %v1426_v43, %v1944_v59  ;;  %v655_v46 = vpop.f32.mrb[17].mxu0 }
 0x110   : > { %v656_v47 = vadd.f32 %v1944_v59, %v655_v46  ;;  %1501 = vmatprep.mubr.f32.mxu1 %v748_v42 }
 0x111   : > { %1502 = vmatmul.mubr.f32.gmra.mrb[14].mxu1 %v749_v44  ;;  %v751_v50 = vmax.f32 %v661_v45, 0.0 }
 0x112   : > { %v750_v48 = vmax.f32 %v656_v47, 0.0  ;;  %v1429_v49 = vpop.f32.mrb[18].mxu0 }
 0x113   : > { %v671_v51 = vadd.f32 %v1429_v49, %v1944_v59  ;;  %v665_v52 = vpop.f32.mrb[19].mxu0 }
 0x114   : > { %v666_v53 = vadd.f32 %v1944_v59, %v665_v52  ;;  %1504 = vmatprep.mubr.f32.mxu1 %v750_v48 }
 0x115   : > { %v753_v54 = vmax.f32 %v671_v51, 0.0  ;;  %1505 = vmatmul.mubr.f32.gmra.mrb[16].mxu1 %v751_v50 }
 0x116   : > { %v752_v55 = vmax.f32 %v666_v53, 0.0  ;;  %v1432_v56 = vpop.f32.mrb[20].mxu0 }
 0x117   : > { %v681_v57 = vadd.f32 %v1432_v56, %v1944_v59  ;;  %v675_v58 = vpop.f32.mrb[21].mxu0 }
 0x118   : > { %1507 = vmatprep.mubr.f32.mxu1 %v752_v55  ;;  %v676_v60 = vadd.f32 %v1944_v59, %v675_v58 }
 0x119   : > { %1508 = vmatmul.mubr.f32.gmra.mrb[18].mxu1 %v753_v54  ;;  %v755_v61 = vmax.f32 %v681_v57, 0.0 }
 0x11a   : > { %v754_v62 = vmax.f32 %v676_v60, 0.0  ;;  %v1435_v63 = vpop.f32.mrb[22].mxu0 }
 0x11b   : > { %v691_v0 = vadd.f32 %v1435_v63, %v1944_v59  ;;  %v685_v1 = vpop.f32.mrb[23].mxu0 }
 0x11c   : > { %1510 = vmatprep.mubr.f32.mxu1 %v754_v62  ;;  %v686_v2 = vadd.f32 %v1944_v59, %v685_v1 }
 0x11d   : > { %1511 = vmatmul.mubr.f32.gmra.mrb[20].mxu1 %v755_v61  ;;  %v757_v3 = vmax.f32 %v691_v0, 0.0 }
 0x11e   : > { %v756_v4 = vmax.f32 %v686_v2, 0.0  ;;  %v1438_v5 = vpop.f32.mrb[24].mxu0 }
 0x11f   : > { %v701_v6 = vadd.f32 %v1438_v5, %v1944_v59  ;;  %v695_v7 = vpop.f32.mrb[25].mxu0 }
 0x120   : > { %1513 = vmatprep.mubr.f32.mxu1 %v756_v4  ;;  %v696_v8 = vadd.f32 %v1944_v59, %v695_v7 }
 0x121   : > { %1514 = vmatmul.mubr.f32.gmra.mrb[22].mxu1 %v757_v3  ;;  %v759_v9 = vmax.f32 %v701_v6, 0.0 }
 0x122   : > { %v758_v10 = vmax.f32 %v696_v8, 0.0  ;;  %v1441_v11 = vpop.f32.mrb[26].mxu0 }
 0x123   : > { %v711_v12 = vadd.f32 %v1441_v11, %v1944_v59  ;;  %v705_v13 = vpop.f32.mrb[27].mxu0 }
 0x124   : > { %1516 = vmatprep.mubr.f32.mxu1 %v758_v10  ;;  %v706_v14 = vadd.f32 %v1944_v59, %v705_v13 }
 0x125   : > { %1517 = vmatmul.mubr.f32.gmra.mrb[24].mxu1 %v759_v9  ;;  %v761_v15 = vmax.f32 %v711_v12, 0.0 }
 0x126   : > { %v760_v16 = vmax.f32 %v706_v14, 0.0  ;;  %v1444_v17 = vpop.f32.mrb[28].mxu0 }
 0x127   : > { %v721_v18 = vadd.f32 %v1444_v17, %v1944_v59  ;;  %v715_v19 = vpop.f32.mrb[29].mxu0 }
 0x128   : > { %1519 = vmatprep.mubr.f32.mxu1 %v760_v16  ;;  %v716_v20 = vadd.f32 %v1944_v59, %v715_v19 }
 0x129   : > { %1520 = vmatmul.mubr.f32.gmra.mrb[26].mxu1 %v761_v15  ;;  %v763_v21 = vmax.f32 %v721_v18, 0.0 }
 0x12a   : > { %v762_v22 = vmax.f32 %v716_v20, 0.0  ;;  %v1447_v23 = vpop.f32.mrb[30].mxu0 }
 0x12b   : > { %v731_v24 = vadd.f32 %v1447_v23, %v1944_v59  ;;  %v725_v25 = vpop.f32.mrb[31].mxu0 }
 0x12c   : > { %1522 = vmatprep.mubr.f32.mxu1 %v762_v22  ;;  %v726_v26 = vadd.f32 %v1944_v59, %v725_v25  ;;  %v1990_v59 = vld [vmem:[%s2104_s6] ss:$0 sm:$0xff] }
 0x12d   : > { %1523 = vmatmul.mubr.f32.gmra.mrb[28].mxu1 %v763_v21  ;;  %v765_v27 = vmax.f32 %v731_v24, 0.0 }
 0x12e   : > { %v764_v28 = vmax.f32 %v726_v26, 0.0 }
 0x130   : > { %1525 = vmatprep.mubr.f32.mxu1 %v764_v28 }
 0x131   : > { %1526 = vmatmul.mubr.f32.gmra.mrb[30].mxu1 %v765_v27 }
 0x1c8   : > { %v1482_v32 = vpop.f32.mrb[0].mxu1 }
 0x1c9   : > { %v861_v33 = vadd.f32 %v1482_v32, %v1990_v59  ;;  %v855_v34 = vpop.f32.mrb[1].mxu1 }
 0x1ca   : > { %v856_v35 = vadd.f32 %v1990_v59, %v855_v34 }
 0x1cb   : > { %v1015_v36 = vmax.f32 %v861_v33, 0.0 }
 0x1cc   : > { %v1014_v37 = vmax.f32 %v856_v35, 0.0  ;;  %v1485_v38 = vpop.f32.mrb[2].mxu1 }
 0x1cd   : > { %v871_v39 = vadd.f32 %v1485_v38, %v1990_v59  ;;  %v865_v40 = vpop.f32.mrb[3].mxu1 }
 0x1ce   : > { %v1566_v41 = vpack.c.bf16 %v1015_v36, %v1014_v37  ;;  %v866_v42 = vadd.f32 %v1990_v59, %v865_v40 }
 0x1cf   : > { %v1017_v43 = vmax.f32 %v871_v39, 0.0 }
 0x1d0   : > { %v1016_v44 = vmax.f32 %v866_v42, 0.0  ;;  %v1488_v45 = vpop.f32.mrb[4].mxu1 }
 0x1d1   : > { %v881_v46 = vadd.f32 %v1488_v45, %v1990_v59  ;;  %v875_v47 = vpop.f32.mrb[5].mxu1 }
 0x1d2   : > { %v1997_v48 = vpack.c.bf16 %v1017_v43, %v1016_v44  ;;  %v876_v49 = vadd.f32 %v1990_v59, %v875_v47 }
 0x1d3   : > { %v1019_v50 = vmax.f32 %v881_v46, 0.0 }
 0x1d4   : > { %v1018_v51 = vmax.f32 %v876_v49, 0.0  ;;  %v1491_v52 = vpop.f32.mrb[6].mxu1 }
 0x1d5   : > { %v891_v53 = vadd.f32 %v1491_v52, %v1990_v59  ;;  %v885_v54 = vpop.f32.mrb[7].mxu1 }
 0x1d6   : > { %v2001_v55 = vpack.c.bf16 %v1019_v50, %v1018_v51  ;;  %v886_v56 = vadd.f32 %v1990_v59, %v885_v54 }
 0x1d7   : > { %v1021_v57 = vmax.f32 %v891_v53, 0.0 }
 0x1d8   : > { %v1020_v58 = vmax.f32 %v886_v56, 0.0  ;;  %v1494_v60 = vpop.f32.mrb[8].mxu1 }
 0x1d9   : > { %v901_v61 = vadd.f32 %v1494_v60, %v1990_v59  ;;  %v895_v62 = vpop.f32.mrb[9].mxu1 }
 0x1da   : > { %v2005_v63 = vpack.c.bf16 %v1021_v57, %v1020_v58  ;;  %v896_v0 = vadd.f32 %v1990_v59, %v895_v62 }
 0x1db   : > { %v1023_v1 = vmax.f32 %v901_v61, 0.0 }
 0x1dc   : > { %v1022_v2 = vmax.f32 %v896_v0, 0.0  ;;  %v1497_v3 = vpop.f32.mrb[10].mxu1 }
 0x1dd   : > { %v911_v4 = vadd.f32 %v1497_v3, %v1990_v59  ;;  %v905_v5 = vpop.f32.mrb[11].mxu1 }
 0x1de   : > { %v2009_v6 = vpack.c.bf16 %v1023_v1, %v1022_v2  ;;  %v906_v7 = vadd.f32 %v1990_v59, %v905_v5 }
 0x1df   : > { %v1025_v8 = vmax.f32 %v911_v4, 0.0 }
 0x1e0   : > { %v1024_v9 = vmax.f32 %v906_v7, 0.0  ;;  %v1500_v10 = vpop.f32.mrb[12].mxu1 }
 0x1e1   : > { %v921_v11 = vadd.f32 %v1500_v10, %v1990_v59  ;;  %v915_v12 = vpop.f32.mrb[13].mxu1 }
 0x1e2   : > { %v2013_v13 = vpack.c.bf16 %v1025_v8, %v1024_v9  ;;  %v916_v14 = vadd.f32 %v1990_v59, %v915_v12 }
 0x1e3   : > { %v1027_v15 = vmax.f32 %v921_v11, 0.0 }
 0x1e4   : > { %v1026_v16 = vmax.f32 %v916_v14, 0.0  ;;  %v1503_v17 = vpop.f32.mrb[14].mxu1 }
 0x1e5   : > { %v931_v18 = vadd.f32 %v1503_v17, %v1990_v59  ;;  %v925_v19 = vpop.f32.mrb[15].mxu1 }
 0x1e6   : > { %v2017_v20 = vpack.c.bf16 %v1027_v15, %v1026_v16  ;;  %v926_v21 = vadd.f32 %v1990_v59, %v925_v19 }
 0x1e7   : > { %v1029_v22 = vmax.f32 %v931_v18, 0.0 }
 0x1e8   : > { %v1028_v23 = vmax.f32 %v926_v21, 0.0  ;;  %v1506_v24 = vpop.f32.mrb[16].mxu1 }
 0x1e9   : > { %v941_v25 = vadd.f32 %v1506_v24, %v1990_v59  ;;  %v935_v26 = vpop.f32.mrb[17].mxu1 }
 0x1ea   : > { %v2021_v27 = vpack.c.bf16 %v1029_v22, %v1028_v23  ;;  %v936_v28 = vadd.f32 %v1990_v59, %v935_v26 }
 0x1eb   : > { %v1031_v30 = vmax.f32 %v941_v25, 0.0 }
 0x1ec   : > { %v1030_v31 = vmax.f32 %v936_v28, 0.0  ;;  %v1509_v32 = vpop.f32.mrb[18].mxu1 }
 0x1ed   : > { %v951_v33 = vadd.f32 %v1509_v32, %v1990_v59  ;;  %v945_v34 = vpop.f32.mrb[19].mxu1 }
 0x1ee   : > { %v1564_v35 = vpack.c.bf16 %v1031_v30, %v1030_v31  ;;  %v946_v36 = vadd.f32 %v1990_v59, %v945_v34  ;;  %v1125_v31 = vld [vmem:[%s370_s26 + $0x1] sm:$0x1] }
 0x1ef   : > { %v1033_v37 = vmax.f32 %v951_v33, 0.0 }
 0x1f0   : > { %v1032_v38 = vmax.f32 %v946_v36, 0.0  ;;  %1565 = vmatprep.subr.bf16.mxu0 %v1564_v35  ;;  %v1512_v39 = vpop.f32.mrb[20].mxu1 }
 0x1f1   : > { %1567 = vmatpush3.bf16.xpose.msra.mxu0 %v1566_v41  ;;  %v961_v40 = vadd.f32 %v1512_v39, %v1990_v59  ;;  %v955_v42 = vpop.f32.mrb[21].mxu1 }
 0x1f2   : > { %v1568_v43 = vpack.c.bf16 %v1033_v37, %v1032_v38  ;;  %v956_v44 = vadd.f32 %v1990_v59, %v955_v42 }
 0x1f3   : > { %v1035_v45 = vmax.f32 %v961_v40, 0.0 }
 0x1f4   : > { %1569 = vmatprep.subr.bf16.mxu0 %v1568_v43  ;;  %v1034_v46 = vmax.f32 %v956_v44, 0.0  ;;  %v1515_v47 = vpop.f32.mrb[22].mxu1 }
 0x1f5   : > { %v971_v49 = vadd.f32 %v1515_v47, %v1990_v59  ;;  %v965_v50 = vpop.f32.mrb[23].mxu1 }
 0x1f6   : > { %v1572_v51 = vpack.c.bf16 %v1035_v45, %v1034_v46  ;;  %v966_v52 = vadd.f32 %v1990_v59, %v965_v50 }
 0x1f7   : > { %v1037_v53 = vmax.f32 %v971_v49, 0.0 }
 0x1f8   : > { %v1036_v54 = vmax.f32 %v966_v52, 0.0  ;;  %v1518_v56 = vpop.f32.mrb[24].mxu1 }
 0x1f9   : > { %1571 = vmatpush3.bf16.xpose.msra.mxu0 %v1997_v48  ;;  %v981_v41 = vadd.f32 %v1518_v56, %v1990_v59  ;;  %v975_v57 = vpop.f32.mrb[25].mxu1 }
 0x1fa   : > { %1573 = vmatprep.subr.bf16.mxu0 %v1572_v51  ;;  %v1576_v58 = vpack.c.bf16 %v1037_v53, %v1036_v54  ;;  %v976_v60 = vadd.f32 %v1990_v59, %v975_v57 }
 0x1fb   : > { %v1039_v61 = vmax.f32 %v981_v41, 0.0 }
 0x1fc   : > { %v1038_v62 = vmax.f32 %v976_v60, 0.0  ;;  %v1521_v0 = vpop.f32.mrb[26].mxu1 }
 0x1fd   : > { %v991_v1 = vadd.f32 %v1521_v0, %v1990_v59  ;;  %v985_v2 = vpop.f32.mrb[27].mxu1 }
 0x1fe   : > { %v1580_v3 = vpack.c.bf16 %v1039_v61, %v1038_v62  ;;  %v986_v4 = vadd.f32 %v1990_v59, %v985_v2 }
 0x1ff   : > { %v1041_v5 = vmax.f32 %v991_v1, 0.0 }
 0x200   : > { %v1040_v7 = vmax.f32 %v986_v4, 0.0  ;;  %v1524_v8 = vpop.f32.mrb[28].mxu1 }
 0x201   : > { %1575 = vmatpush3.bf16.xpose.msra.mxu0 %v2001_v55  ;;  %v1001_v48 = vadd.f32 %v1524_v8, %v1990_v59  ;;  %v995_v9 = vpop.f32.mrb[29].mxu1 }
 0x202   : > { %1577 = vmatprep.subr.bf16.mxu0 %v1576_v58  ;;  %v1584_v10 = vpack.c.bf16 %v1041_v5, %v1040_v7  ;;  %v996_v11 = vadd.f32 %v1990_v59, %v995_v9 }
 0x203   : > { %v1043_v12 = vmax.f32 %v1001_v48, 0.0 }
 0x204   : > { %v1042_v14 = vmax.f32 %v996_v11, 0.0  ;;  %v1527_v15 = vpop.f32.mrb[30].mxu1 }
 0x205   : > { %v1011_v16 = vadd.f32 %v1527_v15, %v1990_v59  ;;  %v1005_v17 = vpop.f32.mrb[31].mxu1 }
 0x206   : > { %v1588_v18 = vpack.c.bf16 %v1043_v12, %v1042_v14  ;;  %v1006_v19 = vadd.f32 %v1990_v59, %v1005_v17  ;;  %v1124_v59 = vld [vmem:[%s370_s26] sm:$0x1] }
 0x207   : > { %v1045_v21 = vmax.f32 %v1011_v16, 0.0 }
 0x208   : > { %v1044_v55 = vmax.f32 %v1006_v19, 0.0 }
 0x209   : > { %1579 = vmatpush3.bf16.xpose.msra.mxu0 %v2005_v63  ;;  %v1127_v63 = vsub.f32 1.0, %v1124_v59 }
 0x20a   : > { %1581 = vmatprep.subr.bf16.mxu0 %v1580_v3  ;;  %v1592_v22 = vpack.c.bf16 %v1045_v21, %v1044_v55 }
 0x20b   : > { %v1129_v24 = vrot.slane %v1127_v63, 7 }
 0x211   : > { %1583 = vmatpush3.bf16.xpose.msra.mxu0 %v2009_v6  ;;  %v1051_v6 = vpop.permute.xlu0 %1050 }
 0x212   : > { %1585 = vmatprep.subr.bf16.mxu0 %v1584_v10 }
 0x219   : > { %1587 = vmatpush3.bf16.xpose.msra.mxu0 %v2013_v13 }
 0x21a   : > { %1589 = vmatprep.subr.bf16.mxu0 %v1588_v18 }
 0x221   : > { %1591 = vmatpush3.bf16.xpose.msra.mxu0 %v2017_v20 }
 0x222   : > { %1593 = vmatprep.subr.bf16.mxu0 %v1592_v22 }
 0x229   : > { %1595 = vmatpush3.bf16.xpose.msra.mxu0 %v2021_v27 }
 0x230   : > { %1395 = vmatmul.mubr.f32.vlgmr.msra.gmra.mrb[32].mxu0 %v1981_v29 }
 0x303   : > { %v1119_v13 = vpop.f32.mrb[32].mxu0 }
 0x304   : > { %v1121_v23 = vpop.f32.mrb[33].mxu0  ;;  %v1120_v26 = vadd.f32 %v1119_v13, %v1051_v6 }
 0x305   : > { %v1122_v20 = vadd.f32 %v1121_v23, %v1051_v6 }
 0x306   : > { %v1137_v28 = vrot.slane %v1120_v26, 1 }
 0x307   : > { %v1126_v25 = vmul.f32 0.99, %v1122_v20 }
 0x309   : > { %v1131_v29 = vmul.f32 %v1129_v24, %v1126_v25 }
 0x30b   : > { %v1133_v27 = vrot.slane %v1131_v29, 1 }
 0x30d   : > { %v1135_v30 = vadd.f32 %v1133_v27, %v1120_v26 }
 0x30f   : > { %v1139_v32 = vsub.f32 %v1135_v30, %v1137_v28 }
 0x311   : > { %v1140_v33 = vsub.f32 %v1139_v32, %v1125_v31 }
 0x313   : > { %1141 = vst [vmem:[%s354_s13] sm:$0x1] %v1140_v33 }
 0x314   : > { %1650 = shalt.err (!%p1647_p4)
}
 0x315   : > { %s1651_s25 = scalar_lea.hbm %s2056_s21, 16  ;;  %s1655_s13 = scalar_lea.hbm %s2107_s9, 32 }
 0x316   : > { %p1652_p7 = scmp.ne.s32.totalorder %s2056_s21, %s1651_s25  ;;  %p1656_p10 = scmp.lt.u32.totalorder %s2056_s21, %s2107_s9 }
 0x317   : > { %p1657_p11 = scmp.lt.u32.totalorder %s1655_s13, %s1651_s25  ;;  %p1659_p13 = scmp.lt.u32.totalorder %s1651_s25, %s2056_s21 }
 0x318   : > { %p1653_p8 = pnand %p1652_p7, %p1791_p5 }
 0x319   : > { %p1658_p12 = por %p1657_p11, %p1656_p10 }
 0x31a   : > { %p1654_p9 = pneg %p1653_p8 }
 0x31b   : > { %p1660_p0 = por %p1659_p13, %p1658_p12 }
 0x31d   : > { %p1661_p1 = pnand %p1660_p0, %p1654_p9 }
 0x31f   : > { %1664 = shalt.err (!%p1661_p1)
}
 0x320   : > { %1596 = dma.vmem_to_hbm [thread:$0]  (%p1791_p5), %s2058_s29, 16, %s2056_s21, %s1143_s23  }
 0x321 PF: > { %p1602_p2 = scmp.ge.s32.totalorder %s1699_s12, 2  ;;  %s1167_s22 = sand.u32 1, %s1687_s30  }
 0x322   : > { %s1168_s28 = scalar_lea.sflag [#allocation3], %s1167_s22 }
 0x323   : > { %p1599_p3 = pnand %p1602_p2, %p1795_p6 }
 0x325   : > { %1682 = dma.done.wait (!%p1599_p3), %s1168_s28, 16  }
 0x326   : > { %1684 = vsyncadd (!%p1599_p3), %s1168_s28, 4294967280  ;;  %p19_p4 = scmp.ge.s32.totalorder %s1778_s15, 4   ;;  %s2110_s30 = smov %s1691_s10 }
 0x327   : > { %s2111_s10 = smov %s1695_s11  ;;  %s2112_s11 = smov %s1789_s18 }
 0x328   : > { %s2113_s12 = smov %s1778_s15  ;;  %21 = sbr.rel (!%p19_p4) target bundleno = 3 (0x3), region = 97 }
 0x32f   :  { %1172 = vsyncpa [#allocation3], 1 }
 0x330   :  { %1174 = vsyncpa [#allocation3 + $0x1], 1 }

</bundles_post_ra>
